<compile_context>
chip_gen: v7x
topology: tpu7x:2x2x1
jax: 0.10.0
libtpu: 0.0.40
codegen_flags: <defaults>
</compile_context>

<pallas_src>
import functools
import math

import jax
import jax.numpy as jnp
from jax import lax
from jax.experimental import pallas as pl
from jax.experimental.pallas import tpu as pltpu

_BBOX_XFORM_CLIP = math.log(1000.0 / 16.0)
_BOX_CODER_WEIGHTS = (1.0, 1.0, 1.0, 1.0)


def _round_up(x, m):
    return ((x + m - 1) // m) * m


# ----------------------------------------------------------------------------
# Kernel 1: fused BoxCoder.decode + clip_to_image + remove_small_boxes mask +
#           area + sigmoid(score) -> single dense (8, K) slab per image.
#   rows: [x1, y1, x2, y2, area, valid, score, zeros]
# ----------------------------------------------------------------------------
def _decode_kernel(imshape_ref, d_ref, a_ref, l_ref, slab_ref, *, min_size, num_valid):
    i = pl.program_id(0)
    # image_shapes is (width, height), matching BoxList.size ordering.
    im_w = imshape_ref[i, 0].astype(jnp.float32)
    im_h = imshape_ref[i, 1].astype(jnp.float32)

    wx, wy, ww, wh = _BOX_CODER_WEIGHTS

    ax1 = a_ref[0:1, :]
    ay1 = a_ref[1:2, :]
    ax2 = a_ref[2:3, :]
    ay2 = a_ref[3:4, :]
    widths = ax2 - ax1 + 1.0
    heights = ay2 - ay1 + 1.0
    ctr_x = ax1 + 0.5 * widths
    ctr_y = ay1 + 0.5 * heights

    dx = d_ref[0:1, :] / wx
    dy = d_ref[1:2, :] / wy
    dw = jnp.minimum(d_ref[2:3, :] / ww, _BBOX_XFORM_CLIP)
    dh = jnp.minimum(d_ref[3:4, :] / wh, _BBOX_XFORM_CLIP)

    pred_ctr_x = dx * widths + ctr_x
    pred_ctr_y = dy * heights + ctr_y
    pred_w = jnp.exp(dw) * widths
    pred_h = jnp.exp(dh) * heights

    x1 = pred_ctr_x - 0.5 * pred_w
    y1 = pred_ctr_y - 0.5 * pred_h
    x2 = pred_ctr_x + 0.5 * pred_w - 1.0
    y2 = pred_ctr_y + 0.5 * pred_h - 1.0

    # clip_to_image (TO_REMOVE = 1)
    x1 = jnp.clip(x1, 0.0, im_w - 1.0)
    y1 = jnp.clip(y1, 0.0, im_h - 1.0)
    x2 = jnp.clip(x2, 0.0, im_w - 1.0)
    y2 = jnp.clip(y2, 0.0, im_h - 1.0)

    bw = x2 - x1 + 1.0
    bh = y2 - y1 + 1.0
    area = bw * bh

    # remove_small_boxes mask (xywh with TO_REMOVE = 1), AND-ed with the lane
    # padding mask (lanes >= num_valid are pure 128-alignment padding).
    lane = lax.broadcasted_iota(jnp.int32, x1.shape, 1)
    valid = ((bw >= min_size) & (bh >= min_size) & (lane < num_valid)).astype(jnp.float32)

    # sigmoid fused here: top-k was done on raw logits (monotonic), the reported
    # objectness scores must still be sigmoid(logit).
    score = jax.nn.sigmoid(l_ref[...])
    zeros = jnp.zeros_like(score)

    # one dense, sublane-full store
    slab_ref[...] = jnp.concatenate([x1, y1, x2, y2, area, valid, score, zeros], axis=0)


def decode_clip_score(deltas_cm, anchors_cm, logits_cm, im_shapes, min_size, num_valid):
    N, _, K = deltas_cm.shape
    kernel = functools.partial(_decode_kernel, min_size=float(min_size),
                               num_valid=int(num_valid))
    return pl.pallas_call(
        kernel,
        out_shape=jax.ShapeDtypeStruct((N, 8, K), jnp.float32),
        grid_spec=pltpu.PrefetchScalarGridSpec(
            num_scalar_prefetch=1,
            grid=(N,),
            in_specs=[
                pl.BlockSpec((None, 4, K), lambda i, s: (i, 0, 0)),
                pl.BlockSpec((None, 4, K), lambda i, s: (i, 0, 0)),
                pl.BlockSpec((None, 1, K), lambda i, s: (i, 0, 0)),
            ],
            out_specs=pl.BlockSpec((None, 8, K), lambda i, s: (i, 0, 0)),
        ),
        compiler_params=pltpu.CompilerParams(dimension_semantics=("parallel",)),
    )(im_shapes, deltas_cm, anchors_cm, logits_cm)


# ----------------------------------------------------------------------------
# Kernel 2: fused greedy NMS (per image).  Boxes are already sorted by
# descending score.  The (K, K) IoU matrix is never materialized: each step
# computes one (1, K) IoU strip against the VMEM-resident slab, checks it
# against the running keep mask and writes one keep bit.
#   slab_ref : (8, K) VMEM  rows [x1, y1, x2, y2, area, valid, score, 0]
#   scal_ref : (N*6, K) SMEM copy of rows [x1, y1, x2, y2, area, valid]
#              (scalar per-box reads for the candidate box of each step)
# ----------------------------------------------------------------------------
def _nms_kernel(slab_ref, scal_ref, keep_ref, *, thresh, num_boxes):
    b = pl.program_id(0)
    base = b * 6

    x1v = slab_ref[0:1, :]
    y1v = slab_ref[1:2, :]
    x2v = slab_ref[2:3, :]
    y2v = slab_ref[3:4, :]
    areav = slab_ref[4:5, :]
    lane = lax.broadcasted_iota(jnp.int32, x1v.shape, 1)
    thr = jnp.float32(thresh)

    def body(i, keep_vec):
        x1i = scal_ref[base + 0, i]
        y1i = scal_ref[base + 1, i]
        x2i = scal_ref[base + 2, i]
        y2i = scal_ref[base + 3, i]
        ai = scal_ref[base + 4, i]
        vi = scal_ref[base + 5, i]

        iw = jnp.maximum(jnp.minimum(x2v, x2i) - jnp.maximum(x1v, x1i) + 1.0, 0.0)
        ih = jnp.maximum(jnp.minimum(y2v, y2i) - jnp.maximum(y1v, y1i) + 1.0, 0.0)
        inter = iw * ih
        # iou > thresh  <=>  inter > thresh * (area_i + area_j - inter); denom >= 1,
        # so no divide is needed in the O(K^2) inner loop.
        over = (inter > thr * (ai + areav - inter)).astype(jnp.float32)

        sup = jnp.max(over * keep_vec, axis=1, keepdims=True)      # (1, 1)
        keep_i = jnp.where(sup > 0.0, 0.0, vi)                     # (1, 1)
        return jnp.where(lane == i, keep_i, keep_vec)

    keep0 = jnp.zeros(x1v.shape, jnp.float32)
    keep_ref[...] = lax.fori_loop(0, num_boxes, body, keep0)


def greedy_nms(slab, thresh, num_boxes):
    """slab: (N, 8, K) from decode_clip_score.  Returns keep mask (N, K) bool."""
    N, _, K = slab.shape
    # TODO(synk): for very large N * K the flat SMEM scalar copy could be
    # replaced by a per-image blocked SMEM spec; fine at RPN sizes.
    scalars = slab[:, 0:6, :].reshape(N * 6, K)
    kernel = functools.partial(_nms_kernel, thresh=float(thresh),
                               num_boxes=int(num_boxes))
    keep = pl.pallas_call(
        kernel,
        out_shape=jax.ShapeDtypeStruct((N, 1, K), jnp.float32),
        grid=(N,),
        in_specs=[
            pl.BlockSpec((None, 8, K), lambda i: (i, 0, 0)),
            pl.BlockSpec(memory_space=pltpu.MemorySpace.SMEM),
        ],
        out_specs=pl.BlockSpec((None, 1, K), lambda i: (i, 0, 0)),
        compiler_params=pltpu.CompilerParams(dimension_semantics=("parallel",)),
    )(slab, scalars)
    return keep[:, 0, :] > 0.5


# ----------------------------------------------------------------------------
# JAX glue
# ----------------------------------------------------------------------------
def permute_and_flatten(layer, N, A, C, H, W):
    layer = layer.reshape(N, A, C, H, W)
    layer = jnp.transpose(layer, (0, 3, 4, 1, 2))
    return layer.reshape(N, -1, C)


def _select_outputs(keep, boxes_rm, scores, post_n):
    """max_proposals truncation + packing into fixed-size padded outputs."""
    N, K = keep.shape
    rank = jnp.cumsum(keep.astype(jnp.int32), axis=1) - 1
    sel = keep & (rank < post_n)
    idx = jnp.arange(K)[None, :]
    sort_key = jnp.where(sel, idx, K + idx)
    order = jnp.argsort(sort_key, axis=1)[:, :post_n]
    valid_out = jnp.take_along_axis(sel, order, axis=1)
    box_idx = jnp.broadcast_to(order[:, :, None], (N, post_n, 4))
    boxes_out = jnp.where(valid_out[:, :, None],
                          jnp.take_along_axis(boxes_rm, box_idx, axis=1), 0.0)
    scores_out = jnp.where(valid_out, jnp.take_along_axis(scores, order, axis=1), 0.0)
    return boxes_out, scores_out, valid_out


class RPNPostProcessorPallas:
    """Eval-mode forward of RPNPostProcessor for a single FPN level.

    Variable-length BoxList outputs are represented as fixed-size
    (N, post_nms_top_n, 4) box arrays + score arrays + validity masks.
    """

    def __init__(self, pre_nms_top_n, post_nms_top_n, nms_thresh, min_size,
                 fpn_post_nms_top_n=None):
        self.pre_nms_top_n = pre_nms_top_n
        self.post_nms_top_n = post_nms_top_n
        self.nms_thresh = nms_thresh
        self.min_size = min_size
        self.fpn_post_nms_top_n = (
            post_nms_top_n if fpn_post_nms_top_n is None else fpn_post_nms_top_n)

    def _process_side(self, objectness, box_regression, anchors, image_shapes):
        N, A, H, W = objectness.shape
        num_anchors = A * H * W
        # image_shapes are (width, height) per image, as in BoxList.size.
        assert image_shapes.shape == (N, 2)

        logits = permute_and_flatten(objectness, N, A, 1, H, W).reshape(N, -1)
        reg_flat = permute_and_flatten(box_regression, N, A, 4, H, W)      # (N, HWA, 4)

        pre_n = min(self.pre_nms_top_n, num_anchors)
        # sigmoid is monotonic: top_k directly on raw logits (no full-tensor
        # sigmoid pass); sigmoid of the selected entries is fused into kernel 1.
        top_logits, topk_idx = lax.top_k(logits, pre_n)                    # sorted desc

        kpad = max(128, _round_up(pre_n, 128))                             # lane-dense K
        if kpad > pre_n:
            pad = kpad - pre_n
            top_logits = jnp.pad(top_logits, ((0, 0), (0, pad)), constant_values=-1e30)
            topk_idx = jnp.pad(topk_idx, ((0, 0), (0, pad)))

        gather_idx = jnp.broadcast_to(topk_idx[:, :, None], (N, kpad, 4))
        reg_top = jnp.take_along_axis(reg_flat, gather_idx, axis=1)        # (N, kpad, 4)
        anc_top = jnp.take_along_axis(anchors, gather_idx, axis=1)         # (N, kpad, 4)

        reg_cm = jnp.transpose(reg_top, (0, 2, 1))                         # (N, 4, kpad)
        anc_cm = jnp.transpose(anc_top, (0, 2, 1))
        logits_cm = top_logits[:, None, :]                                 # (N, 1, kpad)

        slab = decode_clip_score(reg_cm, anc_cm, logits_cm, image_shapes,  # kernel 1
                                 self.min_size, pre_n)
        keep = greedy_nms(slab, self.nms_thresh, pre_n)                    # kernel 2

        boxes_rm = jnp.transpose(slab[:, 0:4, :], (0, 2, 1))               # (N, kpad, 4)
        scores = slab[:, 6, :]                                             # sigmoid scores
        return _select_outputs(keep, boxes_rm, scores, self.post_nms_top_n)

    def __call__(self, anchors_left, anchors_right, image_shapes,
                 objectness_left, objectness_right,
                 box_regression_left, box_regression_right):
        # TODO(synk): joint left/right boxlist_nms semantics are repo specific;
        # here NMS is applied independently per side with its own objectness.
        # TODO(synk): add_gt_proposals and multi-level select_over_all_levels are
        # not exercised (eval mode, single FPN level), matching the reference
        # control flow for num_levels == 1 / training == False.
        left = self._process_side(objectness_left, box_regression_left,
                                  anchors_left, image_shapes)
        right = self._process_side(objectness_right, box_regression_right,
                                   anchors_right, image_shapes)
        return {
            "boxes_left": left[0], "scores_left": left[1], "valid_left": left[2],
            "boxes_right": right[0], "scores_right": right[1], "valid_right": right[2],
        }


def make_anchors(A, H, W, stride, sizes):
    """Deterministic anchors in (H, W, A) order, matching permute_and_flatten."""
    ys = (jnp.arange(H, dtype=jnp.float32) + 0.5) * stride
    xs = (jnp.arange(W, dtype=jnp.float32) + 0.5) * stride
    cy, cx = jnp.meshgrid(ys, xs, indexing="ij")            # (H, W)
    sizes = jnp.asarray(sizes, jnp.float32)                 # (A,)
    half = sizes / 2.0
    cx = cx[:, :, None]
    cy = cy[:, :, None]
    x1 = cx - half
    y1 = cy - half
    x2 = cx + half - 1.0
    y2 = cy + half - 1.0
    anch = jnp.stack([x1, y1, x2, y2], axis=-1)             # (H, W, A, 4)
    return anch.reshape(-1, 4)                              # (H*W*A, 4)


if __name__ == "__main__":
    key = jax.random.PRNGKey(0)
    N, A, H, W = 2, 4, 16, 16

    k1, k2, k3, k4 = jax.random.split(key, 4)
    objectness_left = jax.random.normal(k1, (N, A, H, W), jnp.float32)
    objectness_right = jax.random.normal(k2, (N, A, H, W), jnp.float32)
    box_regression_left = 0.5 * jax.random.normal(k3, (N, A * 4, H, W), jnp.float32)
    box_regression_right = 0.5 * jax.random.normal(k4, (N, A * 4, H, W), jnp.float32)

    anch = make_anchors(A, H, W, stride=8, sizes=(16.0, 32.0, 48.0, 64.0))
    anchors_left = jnp.broadcast_to(anch[None], (N, A * H * W, 4))
    anchors_right = anchors_left
    # per-image (width, height) as in BoxList.size
    image_shapes = jnp.array([[128, 128], [120, 112]], jnp.int32)

    post = RPNPostProcessorPallas(
        pre_nms_top_n=256, post_nms_top_n=64, nms_thresh=0.7, min_size=4)

    out = post(anchors_left, anchors_right, image_shapes,
               objectness_left, objectness_right,
               box_regression_left, box_regression_right)
    jax.block_until_ready(out)

    assert out["boxes_left"].shape == (N, 64, 4)
    assert out["scores_right"].shape == (N, 64)
    print("KERNEL_OK")
</pallas_src>

<mosaic_0001>
module attributes {stable_mosaic.version = 11 : i64} {
  func.func @_decode_kernel(%arg0: i32, %arg1: memref<2x2xi32, #tpu.memory_space<smem>>, %arg2: memref<1x4x256xf32, #tpu.memory_space<vmem>>, %arg3: memref<1x4x256xf32, #tpu.memory_space<vmem>>, %arg4: memref<1x1x256xf32, #tpu.memory_space<vmem>>, %arg5: memref<1x8x256xf32, #tpu.memory_space<vmem>>) attributes {dimension_semantics = [#tpu.dimension_semantics<parallel>], iteration_bounds = array<i64: 2>, scalar_prefetch = 1 : i64, scratch_operands = 0 : i64, tpu.core_type = #tpu.core_type<tc>, window_params = [{transform_indices = @transform_0, window_bounds = array<i64: 1, 4, 256>}, {transform_indices = @transform_1, window_bounds = array<i64: 1, 4, 256>}, {transform_indices = @transform_2, window_bounds = array<i64: 1, 1, 256>}, {transform_indices = @transform_3, window_bounds = array<i64: 1, 8, 256>}]} {
    %0 = arith.index_cast %arg0 : i32 to index
    %c0 = arith.constant 0 : index
    %1 = memref.load %arg1[%0, %c0] : memref<2x2xi32, #tpu.memory_space<smem>>
    %2 = arith.sitofp %1 : i32 to f32
    %3 = arith.index_cast %arg0 : i32 to index
    %c1 = arith.constant 1 : index
    %4 = memref.load %arg1[%3, %c1] : memref<2x2xi32, #tpu.memory_space<smem>>
    %5 = arith.sitofp %4 : i32 to f32
    %c0_0 = arith.constant 0 : index
    %c0_1 = arith.constant 0 : index
    %c0_2 = arith.constant 0 : index
    %6 = vector.load %arg3[%c0_0, %c0_1, %c0_2] : memref<1x4x256xf32, #tpu.memory_space<vmem>>, vector<1x1x256xf32>
    %7 = vector.shape_cast %6 : vector<1x1x256xf32> to vector<1x256xf32>
    %c0_3 = arith.constant 0 : index
    %c1_4 = arith.constant 1 : index
    %c0_5 = arith.constant 0 : index
    %8 = vector.load %arg3[%c0_3, %c1_4, %c0_5] : memref<1x4x256xf32, #tpu.memory_space<vmem>>, vector<1x1x256xf32>
    %9 = vector.shape_cast %8 : vector<1x1x256xf32> to vector<1x256xf32>
    %c0_6 = arith.constant 0 : index
    %c2 = arith.constant 2 : index
    %c0_7 = arith.constant 0 : index
    %10 = vector.load %arg3[%c0_6, %c2, %c0_7] : memref<1x4x256xf32, #tpu.memory_space<vmem>>, vector<1x1x256xf32>
    %11 = vector.shape_cast %10 : vector<1x1x256xf32> to vector<1x256xf32>
    %c0_8 = arith.constant 0 : index
    %c3 = arith.constant 3 : index
    %c0_9 = arith.constant 0 : index
    %12 = vector.load %arg3[%c0_8, %c3, %c0_9] : memref<1x4x256xf32, #tpu.memory_space<vmem>>, vector<1x1x256xf32>
    %13 = vector.shape_cast %12 : vector<1x1x256xf32> to vector<1x256xf32>
    %14 = arith.subf %11, %7 : vector<1x256xf32>
    %cst = arith.constant 1.000000e+00 : f32
    %15 = vector.broadcast %cst : f32 to vector<1x256xf32>
    %16 = arith.addf %14, %15 : vector<1x256xf32>
    %17 = arith.subf %13, %9 : vector<1x256xf32>
    %cst_10 = arith.constant 1.000000e+00 : f32
    %18 = vector.broadcast %cst_10 : f32 to vector<1x256xf32>
    %19 = arith.addf %17, %18 : vector<1x256xf32>
    %cst_11 = arith.constant 5.000000e-01 : f32
    %20 = vector.broadcast %cst_11 : f32 to vector<1x256xf32>
    %21 = arith.mulf %20, %16 : vector<1x256xf32>
    %22 = arith.addf %7, %21 : vector<1x256xf32>
    %cst_12 = arith.constant 5.000000e-01 : f32
    %23 = vector.broadcast %cst_12 : f32 to vector<1x256xf32>
    %24 = arith.mulf %23, %19 : vector<1x256xf32>
    %25 = arith.addf %9, %24 : vector<1x256xf32>
    %c0_13 = arith.constant 0 : index
    %c0_14 = arith.constant 0 : index
    %c0_15 = arith.constant 0 : index
    %26 = vector.load %arg2[%c0_13, %c0_14, %c0_15] : memref<1x4x256xf32, #tpu.memory_space<vmem>>, vector<1x1x256xf32>
    %27 = vector.shape_cast %26 : vector<1x1x256xf32> to vector<1x256xf32>
    %cst_16 = arith.constant 1.000000e+00 : f32
    %28 = vector.broadcast %cst_16 : f32 to vector<1x256xf32>
    %29 = arith.divf %27, %28 : vector<1x256xf32>
    %c0_17 = arith.constant 0 : index
    %c1_18 = arith.constant 1 : index
    %c0_19 = arith.constant 0 : index
    %30 = vector.load %arg2[%c0_17, %c1_18, %c0_19] : memref<1x4x256xf32, #tpu.memory_space<vmem>>, vector<1x1x256xf32>
    %31 = vector.shape_cast %30 : vector<1x1x256xf32> to vector<1x256xf32>
    %cst_20 = arith.constant 1.000000e+00 : f32
    %32 = vector.broadcast %cst_20 : f32 to vector<1x256xf32>
    %33 = arith.divf %31, %32 : vector<1x256xf32>
    %c0_21 = arith.constant 0 : index
    %c2_22 = arith.constant 2 : index
    %c0_23 = arith.constant 0 : index
    %34 = vector.load %arg2[%c0_21, %c2_22, %c0_23] : memref<1x4x256xf32, #tpu.memory_space<vmem>>, vector<1x1x256xf32>
    %35 = vector.shape_cast %34 : vector<1x1x256xf32> to vector<1x256xf32>
    %cst_24 = arith.constant 1.000000e+00 : f32
    %36 = vector.broadcast %cst_24 : f32 to vector<1x256xf32>
    %37 = arith.divf %35, %36 : vector<1x256xf32>
    %cst_25 = arith.constant 4.13516665 : f32
    %38 = vector.broadcast %cst_25 : f32 to vector<1x256xf32>
    %39 = arith.minimumf %37, %38 : vector<1x256xf32>
    %c0_26 = arith.constant 0 : index
    %c3_27 = arith.constant 3 : index
    %c0_28 = arith.constant 0 : index
    %40 = vector.load %arg2[%c0_26, %c3_27, %c0_28] : memref<1x4x256xf32, #tpu.memory_space<vmem>>, vector<1x1x256xf32>
    %41 = vector.shape_cast %40 : vector<1x1x256xf32> to vector<1x256xf32>
    %cst_29 = arith.constant 1.000000e+00 : f32
    %42 = vector.broadcast %cst_29 : f32 to vector<1x256xf32>
    %43 = arith.divf %41, %42 : vector<1x256xf32>
    %cst_30 = arith.constant 4.13516665 : f32
    %44 = vector.broadcast %cst_30 : f32 to vector<1x256xf32>
    %45 = arith.minimumf %43, %44 : vector<1x256xf32>
    %46 = arith.mulf %29, %16 : vector<1x256xf32>
    %47 = arith.addf %46, %22 : vector<1x256xf32>
    %48 = arith.mulf %33, %19 : vector<1x256xf32>
    %49 = arith.addf %48, %25 : vector<1x256xf32>
    %50 = math.exp %39 : vector<1x256xf32>
    %51 = arith.mulf %50, %16 : vector<1x256xf32>
    %52 = math.exp %45 : vector<1x256xf32>
    %53 = arith.mulf %52, %19 : vector<1x256xf32>
    %cst_31 = arith.constant 5.000000e-01 : f32
    %54 = vector.broadcast %cst_31 : f32 to vector<1x256xf32>
    %55 = arith.mulf %54, %51 : vector<1x256xf32>
    %56 = arith.subf %47, %55 : vector<1x256xf32>
    %cst_32 = arith.constant 5.000000e-01 : f32
    %57 = vector.broadcast %cst_32 : f32 to vector<1x256xf32>
    %58 = arith.mulf %57, %53 : vector<1x256xf32>
    %59 = arith.subf %49, %58 : vector<1x256xf32>
    %cst_33 = arith.constant 5.000000e-01 : f32
    %60 = vector.broadcast %cst_33 : f32 to vector<1x256xf32>
    %61 = arith.mulf %60, %51 : vector<1x256xf32>
    %62 = arith.addf %47, %61 : vector<1x256xf32>
    %cst_34 = arith.constant 1.000000e+00 : f32
    %63 = vector.broadcast %cst_34 : f32 to vector<1x256xf32>
    %64 = arith.subf %62, %63 : vector<1x256xf32>
    %cst_35 = arith.constant 5.000000e-01 : f32
    %65 = vector.broadcast %cst_35 : f32 to vector<1x256xf32>
    %66 = arith.mulf %65, %53 : vector<1x256xf32>
    %67 = arith.addf %49, %66 : vector<1x256xf32>
    %cst_36 = arith.constant 1.000000e+00 : f32
    %68 = vector.broadcast %cst_36 : f32 to vector<1x256xf32>
    %69 = arith.subf %67, %68 : vector<1x256xf32>
    %cst_37 = arith.constant 1.000000e+00 : f32
    %70 = arith.subf %2, %cst_37 : f32
    %cst_38 = arith.constant 0.000000e+00 : f32
    %71 = vector.broadcast %cst_38 : f32 to vector<1x256xf32>
    %72 = arith.maximumf %71, %56 : vector<1x256xf32>
    %73 = vector.broadcast %70 : f32 to vector<1x256xf32>
    %74 = arith.minimumf %73, %72 : vector<1x256xf32>
    %cst_39 = arith.constant 1.000000e+00 : f32
    %75 = arith.subf %5, %cst_39 : f32
    %cst_40 = arith.constant 0.000000e+00 : f32
    %76 = vector.broadcast %cst_40 : f32 to vector<1x256xf32>
    %77 = arith.maximumf %76, %59 : vector<1x256xf32>
    %78 = vector.broadcast %75 : f32 to vector<1x256xf32>
    %79 = arith.minimumf %78, %77 : vector<1x256xf32>
    %cst_41 = arith.constant 1.000000e+00 : f32
    %80 = arith.subf %2, %cst_41 : f32
    %cst_42 = arith.constant 0.000000e+00 : f32
    %81 = vector.broadcast %cst_42 : f32 to vector<1x256xf32>
    %82 = arith.maximumf %81, %64 : vector<1x256xf32>
    %83 = vector.broadcast %80 : f32 to vector<1x256xf32>
    %84 = arith.minimumf %83, %82 : vector<1x256xf32>
    %cst_43 = arith.constant 1.000000e+00 : f32
    %85 = arith.subf %5, %cst_43 : f32
    %cst_44 = arith.constant 0.000000e+00 : f32
    %86 = vector.broadcast %cst_44 : f32 to vector<1x256xf32>
    %87 = arith.maximumf %86, %69 : vector<1x256xf32>
    %88 = vector.broadcast %85 : f32 to vector<1x256xf32>
    %89 = arith.minimumf %88, %87 : vector<1x256xf32>
    %90 = arith.subf %84, %74 : vector<1x256xf32>
    %cst_45 = arith.constant 1.000000e+00 : f32
    %91 = vector.broadcast %cst_45 : f32 to vector<1x256xf32>
    %92 = arith.addf %90, %91 : vector<1x256xf32>
    %93 = arith.subf %89, %79 : vector<1x256xf32>
    %cst_46 = arith.constant 1.000000e+00 : f32
    %94 = vector.broadcast %cst_46 : f32 to vector<1x256xf32>
    %95 = arith.addf %93, %94 : vector<1x256xf32>
    %96 = arith.mulf %92, %95 : vector<1x256xf32>
    %97 = tpu.iota {dimensions = array<i32: 1>} : vector<1x256xi32>
    %cst_47 = arith.constant 4.000000e+00 : f32
    %98 = vector.broadcast %cst_47 : f32 to vector<1x256xf32>
    %99 = arith.cmpf oge, %92, %98 : vector<1x256xf32>
    %cst_48 = arith.constant 4.000000e+00 : f32
    %100 = vector.broadcast %cst_48 : f32 to vector<1x256xf32>
    %101 = arith.cmpf oge, %95, %100 : vector<1x256xf32>
    %102 = arith.andi %99, %101 : vector<1x256xi1>
    %c256_i32 = arith.constant 256 : i32
    %103 = vector.broadcast %c256_i32 : i32 to vector<1x256xi32>
    %104 = arith.cmpi slt, %97, %103 : vector<1x256xi32>
    %105 = arith.andi %102, %104 : vector<1x256xi1>
    %106 = arith.extui %105 : vector<1x256xi1> to vector<1x256xi32>
    %107 = arith.sitofp %106 : vector<1x256xi32> to vector<1x256xf32>
    %c0_49 = arith.constant 0 : index
    %c0_50 = arith.constant 0 : index
    %c0_51 = arith.constant 0 : index
    %108 = vector.load %arg4[%c0_49, %c0_50, %c0_51] : memref<1x1x256xf32, #tpu.memory_space<vmem>>, vector<1x1x256xf32>
    %109 = vector.shape_cast %108 : vector<1x1x256xf32> to vector<1x256xf32>
    %110 = arith.negf %109 : vector<1x256xf32>
    %111 = math.exp %110 : vector<1x256xf32>
    %cst_52 = arith.constant 1.000000e+00 : f32
    %112 = vector.broadcast %cst_52 : f32 to vector<1x256xf32>
    %113 = arith.addf %112, %111 : vector<1x256xf32>
    %114 = arith.divf %112, %113 : vector<1x256xf32>
    %cst_53 = arith.constant 0.000000e+00 : f32
    %115 = vector.broadcast %cst_53 : f32 to vector<1x256xf32>
    %116 = tpu.concatenate %74, %79, %84, %89, %96, %107, %114, %115 in 0 : vector<1x256xf32>, vector<1x256xf32>, vector<1x256xf32>, vector<1x256xf32>, vector<1x256xf32>, vector<1x256xf32>, vector<1x256xf32>, vector<1x256xf32> -> vector<8x256xf32>
    %c0_54 = arith.constant 0 : index
    %c0_55 = arith.constant 0 : index
    %c0_56 = arith.constant 0 : index
    %117 = vector.load %arg5[%c0_54, %c0_55, %c0_56] : memref<1x8x256xf32, #tpu.memory_space<vmem>>, vector<1x8x256xf32>
    %118 = vector.shape_cast %117 : vector<1x8x256xf32> to vector<8x256xf32>
    %119 = vector.shape_cast %116 : vector<8x256xf32> to vector<1x8x256xf32>
    tpu.vector_store %arg5[%c0_54, %c0_55, %c0_56], %119 {strides = array<i32>} : memref<1x8x256xf32, #tpu.memory_space<vmem>>, vector<1x8x256xf32>,
    return
  }
  func.func @transform_0(%arg0: i32, %arg1: memref<2x2xi32, #tpu.memory_space<smem>>) -> (i32, i32, i32) {
    %c0_i32 = arith.constant 0 : i32
    %c0_i32_0 = arith.constant 0 : i32
    %c0_i32_1 = arith.constant 0 : i32
    return %arg0, %c0_i32, %c0_i32_0 : i32, i32, i32
  }
  func.func @transform_1(%arg0: i32, %arg1: memref<2x2xi32, #tpu.memory_space<smem>>) -> (i32, i32, i32) {
    %c0_i32 = arith.constant 0 : i32
    %c0_i32_0 = arith.constant 0 : i32
    %c0_i32_1 = arith.constant 0 : i32
    return %arg0, %c0_i32, %c0_i32_0 : i32, i32, i32
  }
  func.func @transform_2(%arg0: i32, %arg1: memref<2x2xi32, #tpu.memory_space<smem>>) -> (i32, i32, i32) {
    %c0_i32 = arith.constant 0 : i32
    %c0_i32_0 = arith.constant 0 : i32
    %c0_i32_1 = arith.constant 0 : i32
    return %arg0, %c0_i32, %c0_i32_0 : i32, i32, i32
  }
  func.func @transform_3(%arg0: i32, %arg1: memref<2x2xi32, #tpu.memory_space<smem>>) -> (i32, i32, i32) {
    %c0_i32 = arith.constant 0 : i32
    %c0_i32_0 = arith.constant 0 : i32
    %c0_i32_1 = arith.constant 0 : i32
    return %arg0, %c0_i32, %c0_i32_0 : i32, i32, i32
  }
}

</mosaic_0001>

<bundles_post_ra>
// kernel: tpu_custom_call.1
= control target key start
LH: loop header
LB: loop body
LE: loop exit
PB: predicated region body
PF: predicated region fallthrough
CT: control target
= control target key end

     0   :  { %s1102_s0 = inlined_call_operand.hbm [shape: s32[2,2], index: 0, kind: input, shape index: {}]   ;;  %s1103_s1 = inlined_call_operand.hbm [shape: f32[2,4,256], index: 1, kind: input, shape index: {}]   ;;  %s1104_s2 = inlined_call_operand.hbm [shape: f32[2,4,256], index: 2, kind: input, shape index: {}]   ;;  %s1105_s3 = inlined_call_operand.vmem [shape: f32[2,1,256], index: 3, kind: input, shape index: {}]   ;;  %s1106_s4 = inlined_call_operand.hbm [shape: f32[2,8,256], index: 4, kind: output, shape index: {}]  }
   0x1   :  { %s666_s17 = scalar_lea.hbm %s1102_s0, 32 }
   0x2   :  { %p667_p0 = scmp.ne.s32.totalorder %s1102_s0, %s666_s17  ;;  %p670_p1 = scmp.lt.u32.totalorder %s666_s17, %s1102_s0 }
   0x4   :  { %p672_p2 = pnand %p670_p1, %p667_p0 }
   0x6   :  { %675 = shalt.err (!%p672_p2)  }
   0x7   :  { %s810_s22 = smov [#allocation3]  }
   0x8   :  { %10 = dma.hbm_to_smem %s1102_s0, 32, %s810_s22, [#allocation2] }
   0x9   :  { %780 = dma.done.wait [#allocation2], 32 }
   0xa   :  { %781 = vsyncadd [#allocation2], 4294967264 }
   0xb   :  { %12 = sfence }
   0xc   :  { %13 = vsyncpa [#allocation5], 0 }
   0xd   :  { %15 = vsyncpa [#allocation5 + $0x1], 0 }
   0xe   :  { %16 = vsyncpa [#allocation8], 0 }
   0xf   :  { %18 = vsyncpa [#allocation8 + $0x1], 0 }
  0x10   :  { %19 = vsyncpa [#allocation6], 0 }
  0x11   :  { %21 = vsyncpa [#allocation6 + $0x1], 0  ;;  %s854_s25 = smov 0   ;;  %s856_s26 = smov 0  }
  0x12   :  { %s858_s27 = smov 0   ;;  %s860_s28 = smov 0  }
  0x13 LB: > { %s875_s0 = sadd.s32 4294967295, %s808_s28   ;;  %s568_s29 = sadd.s32 4294967294, %s808_s28   ;;  %s808_s28 = sphi %s860_s28, %s1125_s28   ;;  %s804_s27 = sphi %s858_s27, %s1124_s27   ;;  %s800_s26 = sphi %s856_s26, %s1123_s26   ;;  %s796_s25 = sphi %s854_s25, %s1122_s25  }
  0x14   : > { %s879_s30 = sadd.s32 1, %s808_s28   ;;  %s34_s5 = sadd.s32 1, %s804_s27 }
  0x15   : > { %s31_s6 = ssub.s32 %s808_s28, %s879_s30  ;;  %p41_p3 = scmp.ne.s32.totalorder %s804_s27, %s800_s26 }
  0x16   : > { %p32_p4 = scmp.eq.s32.totalorder %s31_s6, 0  ;;  %p42_p5 = scmp.eq.s32.totalorder %s808_s28, 0 }
  0x17   : > { %p47_p6 = scmp.ne.s32.totalorder %s800_s26, %s796_s25  ;;  %p48_p7 = scmp.eq.s32.totalorder %s875_s0, 0 }
  0x18   : > { %s891_s7 = scalar_select %p32_p4, %s804_s27, %s34_s5  }
  0x19   : > { %p893_p8 = por %p42_p5, %p41_p3  ;;  %p897_p9 = por %p48_p7, %p47_p6 }
  0x1a   : > { %p123_p10 = scmp.eq.s32.totalorder %s875_s0, 1  ;;  %p129_p11 = scmp.eq.s32.totalorder %s568_s29, 1 }
  0x1b   : > { %s1110_s9 = scalar_select %p897_p9, 1, 0 }
  0x1c   : > { %p620_p13 = scmp.lt.s32.totalorder %s808_s28, 2  ;;  %p904_p0 = por %p123_p10, %p41_p3 }
  0x1d   : > { %p908_p1 = por %p129_p11, %p47_p6  ;;  %s913_s12 = sand.u32 1, %s804_s27  }
  0x1e   : > { %s1111_s10 = scalar_select %p904_p0, 1, 0 }
  0x1f   : > { %s1112_s11 = scalar_select %p908_p1, 1, 0 }
  0x20   : > { %s600_s13 = sshll.u32 %s808_s28, 7  ;;  %s571_s14 = sshll.u32 %s913_s12, 3 }
  0x21   : > { %s922_s17 = scalar_lea.hbm %s1103_s1, %s600_s13  ;;  %s153_s18 = scalar_lea.vmem [#allocation4], %s571_s14 }
  0x22   : > { %s161_s19 = sshll.u32 %s153_s18, 4  ;;  %p928_p2 = pnand %p620_p13, %p893_p8  ;;  %s932_s19 = int_to_ptr.vmem [resolvable:$true] %s161_s19 }
  0x23   : > { %s150_s21 = scalar_lea.sflag [#allocation5], %s913_s12  ;;  %s676_s22 = scalar_lea.hbm %s922_s17, 128 }
  0x24   : > { %p677_p5 = scmp.ne.s32.totalorder %s922_s17, %s676_s22  ;;  %p678_p6 = pneg %p928_p2 }
  0x25   : > { %s681_s29 = scalar_lea.hbm %s1103_s1, 256  ;;  %p682_p8 = scmp.lt.u32.totalorder %s922_s17, %s1103_s1 }
  0x26   : > { %p679_p7 = pnand %p678_p6, %p677_p5  ;;  %p683_p11 = scmp.lt.u32.totalorder %s681_s29, %s676_s22 }
  0x27   : > { %p685_p12 = scmp.lt.u32.totalorder %s676_s22, %s922_s17 }
  0x28   : > { %p680_p10 = pneg %p679_p7  ;;  %p684_p13 = por %p683_p11, %p682_p8 }
  0x2a   : > { %p686_p3 = por %p685_p12, %p684_p13 }
  0x2c   : > { %p687_p4 = pnand %p686_p3, %p680_p10 }
  0x2e   : > { %690 = shalt.err (!%p687_p4)
}
  0x2f   : > { %s691_s8 = scalar_lea.vmem %s932_s19, 128  ;;  %s811_s15 = smov [#allocation4]  }
  0x30   : > { %p692_p5 = scmp.ne.s32.totalorder %s932_s19, %s691_s8  ;;  %s696_s16 = sshll.u32 %s811_s15, 4  ;;  %s697_s16 = int_to_ptr.vmem [resolvable:$false] %s696_s16 }
  0x31   : > { %s698_s18 = scalar_lea.vmem %s697_s16, 256  ;;  %p699_p0 = scmp.lt.s32.totalorder %s932_s19, %s697_s16 }
  0x32   : > { %p694_p7 = pnand %p692_p5, %p678_p6  ;;  %p700_p8 = scmp.lt.s32.totalorder %s698_s18, %s691_s8 }
  0x34   : > { %p695_p1 = pneg %p694_p7  ;;  %p701_p11 = por %p700_p8, %p699_p0 }
  0x36   : > { %p702_p12 = pnand %p701_p11, %p695_p1 }
  0x38   : > { %705 = shalt.err (!%p702_p12)
}
  0x39   : > { %612 = dma.hbm_to_vmem [thread:$0]  (!%p928_p2), %s922_s17, 128, %s932_s19, %s150_s21  }
  0x3a   : > { %p1114_p3 = scmp.lt.s32.totalorder %s808_s28, 3  ;;  %p1115_p4 = scmp.ge.s32.totalorder %s808_s28, 1 }
  0x3b   : > { %s975_s29 = scalar_lea.hbm %s1104_s2, %s600_s13  ;;  %s172_s5 = scalar_lea.vmem [#allocation7], %s571_s14 }
  0x3c   : > { %p966_p10 = pnand %p1115_p4, %p1114_p3  ;;  %s180_s6 = sshll.u32 %s172_s5, 4  ;;  %s181_s6 = int_to_ptr.vmem [resolvable:$true] %s180_s6 }
  0x3d   : > { %s169_s17 = scalar_lea.sflag [#allocation8], %s913_s12  ;;  %s706_s19 = scalar_lea.hbm %s975_s29, 128 }
  0x3e   : > { %s1116_s22 = scalar_select %p966_p10, 1, 0 }
  0x3f   : > { %p707_p0 = scmp.ne.s32.totalorder %s975_s29, %s706_s19  ;;  %s711_s13 = scalar_lea.hbm %s1104_s2, 256 }
  0x40   : > { %p712_p5 = scmp.lt.u32.totalorder %s975_s29, %s1104_s2  ;;  %p713_p7 = scmp.lt.u32.totalorder %s711_s13, %s706_s19 }
  0x41   : > { %p709_p1 = pnand %p707_p0, %p678_p6  ;;  %p715_p11 = scmp.lt.u32.totalorder %s706_s19, %s975_s29 }
  0x42   : > { %p714_p8 = por %p713_p7, %p712_p5 }
  0x43   : > { %p710_p13 = pneg %p709_p1 }
  0x44   : > { %p716_p12 = por %p715_p11, %p714_p8 }
  0x46   : > { %p717_p3 = pnand %p716_p12, %p710_p13 }
  0x48   : > { %720 = shalt.err (!%p717_p3)
}
  0x49   : > { %s721_s12 = scalar_lea.vmem %s181_s6, 128  ;;  %s812_s14 = smov [#allocation7]  }
  0x4a   : > { %p722_p4 = scmp.ne.s32.totalorder %s181_s6, %s721_s12  ;;  %s726_s18 = sshll.u32 %s812_s14, 4  ;;  %s727_s18 = int_to_ptr.vmem [resolvable:$false] %s726_s18 }
  0x4b   : > { %s728_s23 = scalar_lea.vmem %s727_s18, 256  ;;  %p729_p9 = scmp.lt.s32.totalorder %s181_s6, %s727_s18 }
  0x4c   : > { %p724_p0 = pnand %p722_p4, %p678_p6  ;;  %p730_p10 = scmp.lt.s32.totalorder %s728_s23, %s721_s12 }
  0x4e   : > { %p725_p1 = pneg %p724_p0  ;;  %p731_p5 = por %p730_p10, %p729_p9 }
  0x50   : > { %p732_p7 = pnand %p731_p5, %p725_p1 }
  0x52   : > { %735 = shalt.err (!%p732_p7)
}
  0x53   : > { %615 = dma.hbm_to_vmem [thread:$0]  (!%p928_p2), %s975_s29, 128, %s181_s6, %s169_s17  }
  0x54   : > { %p1117_p13 = scmp.ne.s32.totalorder %s1116_s22, 0 }
  0x55   : > { %s1002_s24 = sand.u32 (!%p1117_p13), 1, %s800_s26   ;;  %p1118_p9 = scmp.ne.s32.totalorder (!%p1117_p13), %s1110_s9, 0 }
  0x56   : > { %196 = sbr.rel (%p1117_p13) target bundleno = 155 (0x9b), region = 32  ;;  %s578_s5 = sshll.u32 (!%p1117_p13), %s1002_s24, 3 }
  0x57   : > { %s199_s19 = scalar_lea.sflag (!%p1117_p13), [#allocation5], %s1002_s24  ;;  %s1006_s21 = scalar_lea.vmem (!%p1117_p13), [#allocation4], %s578_s5 }
  0x5d   : > { %783 = dma.done.wait (%p1118_p9), %s199_s19, 128  }
  0x5e   : > { %785 = vsyncadd (%p1118_p9), %s199_s19, 4294967168  ;;  %s208_s20 = scalar_lea.sflag [#allocation8], %s1002_s24  ;;  %s211_s22 = scalar_lea.vmem [#allocation7], %s578_s5 }
  0x5f   : > { %787 = dma.done.wait (%p1118_p9), %s208_s20, 128  }
  0x60   : > { %789 = vsyncadd (%p1118_p9), %s208_s20, 4294967168  ;;  %p243_p2 = scmp.lt.s32.totalorder %s875_s0, 1  ;;  %s582_s17 = sshll.u32 %s875_s0, 7  ;;  %v253_v0 = vld [vmem:[%s211_s22] ss:$4 sm:$0x3]  ;;  %v326_v24 = vlaneseq }
  0x61   : > { %v584_v1 = vld [vmem:[%s211_s22 + $0x2] ss:$4 sm:$0x3]  ;;  %v583_v2 = vld [vmem:[%s211_s22 + $0x1] ss:$4 sm:$0x3] }
  0x62   : > { %s244_s29 = scalar_select %p243_p2, %s875_s0, 1  ;;  %v585_v3 = vld [vmem:[%s211_s22 + $0x3] ss:$4 sm:$0x3]  ;;  %v260_v6 = vsub.f32 %v584_v1, %v253_v0  ;;  %v813_v22 = vmov 1966171168  }
  0x63   : > { %v587_v4 = vld [vmem:[%s1006_s21 + $0x2] ss:$4 sm:$0x3]  ;;  %v588_v5 = vld [vmem:[%s1006_s21 + $0x3] ss:$4 sm:$0x3]  ;;  %v262_v9 = vsub.f32 %v585_v3, %v583_v2  ;;  %v324_v23 = vunpack.c.l.s4 %v813_v22 }
  0x64   : > { %s581_s6 = sshll.u32 %s244_s29, 1  ;;  %v273_v7 = vmin.f32 %v587_v4, 4.1351666  ;;  %v276_v8 = vmin.f32 %v588_v5, 4.1351666  ;;  %s250_s9 = sadd.s32 1, %s582_s17 }
  0x65   : > { %s246_s15 = scalar_lea.vmem %s1105_s3, %s581_s6  ;;  %v261_v14 = vadd.f32 1.0, %v260_v6  ;;  %s248_s16 = sld [smem:[#allocation3 + %s582_s17]]  ;;  %v263_v15 = vadd.f32 1.0, %v262_v9  ;;  %v268_v18 = vld [vmem:[%s1006_s21] ss:$4 sm:$0x3]  ;;  %v325_v31 = vunpack.c.0.s8 %v324_v23 }
  0x66   : > { %v341_v10 = vld [vmem:[%s246_s15] sm:$0x3]  ;;  %v281_v11 = vmul.f32 1.442695, %v273_v7  ;;  %v284_v12 = vmul.f32 1.442695, %v276_v8 }
  0x67   : > { %v594_v13 = vmul.f32 -1.442695, %v341_v10  ;;  %s251_s12 = sld [smem:[#allocation3 + %s250_s9]]  ;;  %v264_v16 = vmul.f32 0.5, %v261_v14  ;;  %v266_v17 = vmul.f32 0.5, %v263_v15  ;;  %v277_v21 = vmul.f32 %v268_v18, %v261_v14  ;;  %s580_s19 = sshll.u32 %s1002_s24, 4 }
  0x68   : > { %658 = vpow2.f32 %v281_v11  ;;  %v586_v19 = vld [vmem:[%s1006_s21 + $0x1] ss:$4 sm:$0x3]  ;;  %v327_v32 = vshrl.u32 %v326_v24, 7  ;;  %v814_v41 = vmov 1   ;;  %vm425_vm0 = vcmask 1040384  }
  0x69   : > { %660 = vpow2.f32 %v284_v12  ;;  %v265_v20 = vadd.f32 %v264_v16, %v253_v0  ;;  %v267_v25 = vadd.f32 %v583_v2, %v266_v17  ;;  %v279_v26 = vmul.f32 %v586_v19, %v263_v15  ;;  %s242_s21 = scalar_lea.vmem [#allocation9], %s580_s19  ;;  %s602_s22 = sshll.u32 %s875_s0, 8 }
  0x6a   : > { %662 = vpow2.f32 %v594_v13  ;;  %v322_v42 = vcombine.low %v814_v41, %v814_v41  ;;  %v328_v43 = vsub.s32 %v325_v31, %v327_v32  ;;  %v1027_v47 = vsub.s32 0, %v327_v32  ;;  %s463_s20 = sshll.u32 %s242_s21, 4  ;;  %s1060_s17 = scalar_lea.hbm %s1106_s4, %s602_s22  ;;  %s1054_s20 = int_to_ptr.vmem [resolvable:$true] %s463_s20 }
  0x6b   : > { %s249_s14 = scvt.s32.f32 %s248_s16  ;;  %v278_v29 = vadd.f32 %v277_v21, %v265_v20  ;;  %v280_v34 = vadd.f32 %v279_v26, %v267_v25  ;;  %v1029_v51 = vsub.s32 1, %v327_v32  ;;  %vm428_vm1 = vcmask 1041408   ;;  %s449_s0 = scalar_lea.sflag [#allocation6], %s1002_s24 }
  0x6c   : > { %v329_v56 = vrot.slane %v322_v42, %v328_v43  ;;  %vm431_vm2 = vcmask 1042432   ;;  %vm434_vm7 = vcmask 1043456   ;;  %vm437_vm9 = vcmask 1044480   ;;  %s736_s8 = scalar_lea.vmem %s1054_s20, 256  ;;  %p1119_p10 = scmp.ne.s32.totalorder %s1111_s10, 0 }
  0x6d   : > { %s252_s18 = scvt.s32.f32 %s251_s12  ;;  %s591_s23 = sadd.f32 -1.0, %s249_s14  ;;  %v815_v20 = vmov 0.0   ;;  %vm440_vm10 = vcmask 1045504   ;;  %vm443_vm11 = vcmask 1046528  }
  0x6e   : > { %v336_v2 = vrot.slane %v329_v56, %v328_v43  ;;  %p737_p6 = scmp.ne.s32.totalorder %s1054_s20, %s736_s8  ;;  %s816_s13 = smov [#allocation9]  }
  0x6f   : > { %s592_s5 = sadd.f32 -1.0, %s252_s18  ;;  %v297_v46 = vstv %s591_s23  ;;  %s740_s15 = sshll.u32 %s816_s13, 4  ;;  %s741_s15 = int_to_ptr.vmem [resolvable:$false] %s740_s15 }
  0x70   : > { %vm337_vm4 = vcmp.ne.s32.totalorder %v336_v2, 0  ;;  %p738_p8 = pnand %p737_p6, %p1119_p10  ;;  %s742_s9 = scalar_lea.vmem %s741_s15, 512 }
  0x71   : > { %v301_v50 = vstv %s592_s5  ;;  %p743_p12 = scmp.lt.s32.totalorder %s1054_s20, %s741_s15  ;;  %p744_p3 = scmp.lt.s32.totalorder %s742_s9, %s736_s8 }
  0x72   : > { %v659_v27 = vpop.eup %658  ;;  %p739_p11 = pneg %p738_p8 }
  0x73   : > { %v661_v28 = vpop.eup %660  ;;  %v283_v30 = vmul.f32 %v659_v27, %v261_v14  ;;  %p745_p4 = por %p744_p3, %p743_p12 }
  0x74   : > { %v663_v33 = vpop.eup %662  ;;  %v286_v35 = vmul.f32 %v661_v28, %v263_v15 }
  0x75   : > { %v287_v36 = vmul.f32 0.5, %v283_v30  ;;  %v345_v38 = vadd.f32 1.0, %v663_v33  ;;  %p746_p0 = pnand %p745_p4, %p739_p11 }
  0x76   : > { %v289_v37 = vmul.f32 0.5, %v286_v35 }
  0x77   : > { %v288_v39 = vsub.f32 %v278_v29, %v287_v36  ;;  %v291_v40 = vadd.f32 %v287_v36, %v278_v29  ;;  %664 = vrcp.f32 %v345_v38 }
  0x78   : > { %v290_v44 = vsub.f32 %v280_v34, %v289_v37  ;;  %v293_v45 = vadd.f32 %v289_v37, %v280_v34 }
  0x79   : > { %v589_v48 = vadd.f32 -1.0, %v291_v40  ;;  %v296_v49 = vmax.f32 %v288_v39, 0.0 }
  0x7a   : > { %v590_v52 = vadd.f32 -1.0, %v293_v45  ;;  %v300_v53 = vmax.f32 %v290_v44, 0.0 }
  0x7b   : > { %v298_v54 = vmin.f32 %v297_v46, %v296_v49  ;;  %v303_v55 = vmax.f32 %v589_v48, 0.0 }
  0x7c   : > { %v302_v57 = vmin.f32 %v301_v50, %v300_v53  ;;  %v305_v58 = vmax.f32 %v590_v52, 0.0 }
  0x7d   : > { %v304_v59 = vmin.f32 %v297_v46, %v303_v55  ;;  %v352_v60 = vrot.slane %v298_v54, %v1027_v47  ;;  %v356_v61 = vrot.slane %v298_v54, %v1029_v51 }
  0x7e   : > { %v306_v62 = vmin.f32 %v301_v50, %v305_v58  ;;  %v363_v63 = vrot.slane %v302_v57, %v1027_v47  ;;  %v367_v0 = vrot.slane %v302_v57, %v1029_v51 }
  0x7f   : > { %v307_v1 = vsub.f32 %v304_v59, %v298_v54  ;;  %v374_v3 = vrot.slane %v304_v59, %v1027_v47  ;;  %v378_v4 = vrot.slane %v304_v59, %v1029_v51 }
  0x80   : > { %v309_v5 = vsub.f32 %v306_v62, %v302_v57  ;;  %v426_v6 = vsel %vm425_vm0, %v352_v60, %v363_v63  ;;  %v385_v8 = vrot.slane %v306_v62, %v1027_v47  ;;  %v389_v9 = vrot.slane %v306_v62, %v1029_v51 }
  0x81   : > { %v308_v7 = vadd.f32 1.0, %v307_v1  ;;  %v427_v10 = vsel %vm425_vm0, %v356_v61, %v367_v0  ;;  %v429_v12 = vsel %vm428_vm1, %v426_v6, %v374_v3  ;;  %v665_v14 = vpop.eup %664 }
  0x82   : > { %v310_v11 = vadd.f32 1.0, %v309_v5  ;;  %v430_v13 = vsel %vm428_vm1, %v427_v10, %v378_v4  ;;  %v432_v16 = vsel %vm431_vm2, %v429_v12, %v385_v8  ;;  %v418_v22 = vrot.slane %v665_v14, %v1027_v47 }
  0x83   : > { %vm315_vm3 = vcmp.ge.f32.partialorder %v308_v7, 4.0  ;;  %v433_v17 = vsel %vm431_vm2, %v430_v13, %v389_v9  ;;  %v422_v23 = vrot.slane %v665_v14, %v1029_v51 }
  0x84   : > { %v311_v15 = vmul.f32 %v310_v11, %v308_v7  ;;  %vm316_vm5 = vcmp.ge.f32.partialorder %v310_v11, 4.0 }
  0x85   : > { %vm317_vm6 = vmand %vm315_vm3, %vm316_vm5 }
  0x86   : > { %vm338_vm8 = vmand %vm317_vm6, %vm337_vm4  ;;  %v396_v18 = vrot.slane %v311_v15, %v1027_v47  ;;  %v400_v19 = vrot.slane %v311_v15, %v1029_v51 }
  0x87   : > { %v593_v21 = vsel %vm338_vm8, 1.0, %v815_v20 }
  0x88   : > { %v407_v24 = vrot.slane %v593_v21, %v1027_v47  ;;  %v435_v25 = vsel %vm434_vm7, %v432_v16, %v396_v18  ;;  %v411_v26 = vrot.slane %v593_v21, %v1029_v51  ;;  %v436_v27 = vsel %vm434_vm7, %v433_v17, %v400_v19 }
  0x8a   : > { %v438_v28 = vsel %vm437_vm9, %v435_v25, %v407_v24  ;;  %v439_v29 = vsel %vm437_vm9, %v436_v27, %v411_v26 }
  0x8b   : > { %v441_v30 = vsel %vm440_vm10, %v438_v28, %v418_v22  ;;  %v442_v31 = vsel %vm440_vm10, %v439_v29, %v422_v23 }
  0x8c   : > { %v444_v32 = vsel %vm443_vm11, %v441_v30, 0.0  ;;  %v445_v33 = vsel %vm443_vm11, %v442_v31, 0.0 }
  0x8d   : > { %446 = vst [vmem:[%s242_s21] sm:$0xff] %v444_v32  ;;  %447 = vst [vmem:[%s242_s21 + $0x8] sm:$0xff] %v445_v33 }
  0x8e   : > { %749 = shalt.err (!%p746_p0)
}
  0x8f   : > { %s750_s24 = scalar_lea.hbm %s1060_s17, 256  ;;  %s754_s14 = scalar_lea.hbm %s1106_s4, 512 }
  0x90   : > { %p751_p1 = scmp.ne.s32.totalorder %s1060_s17, %s750_s24  ;;  %p755_p13 = scmp.lt.u32.totalorder %s1060_s17, %s1106_s4 }
  0x91   : > { %p756_p9 = scmp.lt.u32.totalorder %s754_s14, %s750_s24  ;;  %p758_p6 = scmp.lt.u32.totalorder %s750_s24, %s1060_s17 }
  0x92   : > { %p752_p5 = pnand %p751_p1, %p1119_p10 }
  0x93   : > { %p757_p2 = por %p756_p9, %p755_p13 }
  0x94   : > { %p753_p7 = pneg %p752_p5 }
  0x95   : > { %p759_p8 = por %p758_p6, %p757_p2 }
  0x97   : > { %p760_p11 = pnand %p759_p8, %p753_p7 }
  0x99   : > { %763 = shalt.err (!%p760_p11)
}
  0x9a   : > { %607 = dma.vmem_to_hbm [thread:$0]  (%p1119_p10), %s1054_s20, 256, %s1060_s17, %s449_s0  }
  0x9b PF: > { %s475_s5 = sand.u32 1, %s796_s25   ;;  %p1120_p12 = scmp.ne.s32.totalorder %s1112_s11, 0 }
  0x9c   : > { %p1121_p3 = scmp.ge.s32.totalorder %s808_s28, 2  ;;  %s476_s19 = scalar_lea.sflag [#allocation6], %s475_s5 }
  0x9e   : > { %p617_p4 = pnand %p1121_p3, %p1120_p12 }
  0xa0   : > { %791 = dma.done.wait (!%p617_p4), %s476_s19, 256  }
  0xa1   : > { %793 = vsyncadd (!%p617_p4), %s476_s19, 4294967040  ;;  %p24_p0 = scmp.ge.s32.totalorder %s879_s30, 4   ;;  %s1122_s25 = smov %s800_s26 }
  0xa2   : > { %s1123_s26 = smov %s804_s27  ;;  %s1124_s27 = smov %s891_s7 }
  0xa3   : > { %s1125_s28 = smov %s879_s30  ;;  %26 = sbr.rel (!%p24_p0) target bundleno = 19 (0x13), region = 99 }
  0xaa   :  { %481 = vsyncpa [#allocation5], 1 }
  0xab   :  { %483 = vsyncpa [#allocation5 + $0x1], 1 }
  0xac   :  { %484 = vsyncpa [#allocation8], 1 }
  0xad   :  { %486 = vsyncpa [#allocation8 + $0x1], 1 }
  0xae   :  { %487 = vsyncpa [#allocation6], 1 }
  0xaf   :  { %489 = vsyncpa [#allocation6 + $0x1], 1 }

</bundles_post_ra>
